<compile_context>
chip_gen: v6e
topology: v6e:2x2x1
jax: 0.10.0
libtpu: 0.0.40
codegen_flags: <defaults>
</compile_context>

<pallas_src>
import math

import jax
import jax.numpy as jnp
from jax.experimental import pallas as pl
from jax.experimental.pallas import tpu as pltpu


_ROW_ALIGN = 16  # bf16 sublane packing: keep each packed segment tile-aligned


def _layout(entries):
    """entries: list of (name, rows). Returns ({name: (offset, rows)}, total_rows)."""
    off, o = {}, 0
    for name, rows in entries:
        off[name] = (o, rows)
        o += -(-rows // _ROW_ALIGN) * _ROW_ALIGN
    return off, o


def _build_kernel(off32, off256):
    """Kernel closes over static row offsets into the two packed weight buffers."""

    def kernel(ctx_ref, f_ref, wp_ref, wq_ref, k_ref, rv_ref):
        def w32(name):
            o, r = off32[name]
            return wp_ref[o:o + r, :]

        def b32(name):
            o, _ = off32[name]
            return wp_ref[o:o + 1, :].astype(jnp.float32)

        def w256(name):
            o, r = off256[name]
            return wq_ref[o:o + r, :]

        def b256(name):
            o, _ = off256[name]
            return wq_ref[o:o + 1, :].astype(jnp.float32)

        def lin(x, wn, bn):
            return jnp.dot(x.astype(jnp.bfloat16), w32(wn),
                           preferred_element_type=jnp.float32) + b32(bn)

        def relu(v):
            return jnp.maximum(v, 0.0)

        # 6-layer MLP `net` (last layer has no ReLU)
        h = relu(lin(ctx_ref[...], "w1", "b1"))
        h = relu(lin(h, "w2", "b2"))
        h = relu(lin(h, "w3", "b3"))
        h = relu(lin(h, "w4", "b4"))
        h = relu(lin(h, "w5", "b5"))
        emb = lin(h, "w6", "b6")
        emb_bf = emb.astype(jnp.bfloat16)

        # k head: 0.001 scale pre-folded into weights; weights replicated across
        # the H*W lanes -> matmul directly yields the broadcast k (lane-dense).
        k_b = (jnp.dot(emb_bf, w256("wk"), preferred_element_type=jnp.float32)
               + b256("bk"))

        # Rv head: cat(embedding, f_flat) folded into split first-layer weights.
        r = relu(jnp.dot(emb_bf, w32("wr1a"), preferred_element_type=jnp.float32)
                 + jnp.dot(f_ref[...], w32("wr1b"), preferred_element_type=jnp.float32)
                 + b32("br1"))
        r = relu(lin(r, "wr2", "br2"))
        rv = (jnp.dot(r.astype(jnp.bfloat16), w256("wr3"),
                      preferred_element_type=jnp.float32) + b256("br3"))

        k_ref[...] = k_b.astype(k_ref.dtype)      # (bm, H*W), lane-dense
        rv_ref[...] = rv.astype(rv_ref.dtype)     # (bm, H*W), lane-dense

    return kernel


def init_params(key, latent_dim, input_dim, hidden_dim):
    """Deterministic PyTorch-style init: uniform(+-1/sqrt(fan_in)); W stored (in,out)."""
    feat1 = math.prod(input_dim[1:])   # C*H*W  (Rv_net extra input)
    feat2 = math.prod(input_dim[2:])   # H*W    (Rv_net output)

    def linear(k, fan_in, fan_out):
        kw, kb = jax.random.split(k)
        bound = 1.0 / math.sqrt(fan_in)
        w = jax.random.uniform(kw, (fan_in, fan_out), jnp.float32, -bound, bound)
        b = jax.random.uniform(kb, (1, fan_out), jnp.float32, -bound, bound)
        return w, b

    keys = jax.random.split(key, 10)
    dims = [(latent_dim, hidden_dim)] + [(hidden_dim, hidden_dim)] * 5
    params = {"net": [linear(keys[i], di, do) for i, (di, do) in enumerate(dims)]}
    params["k"] = linear(keys[6], hidden_dim, 1)
    wr1, br1 = linear(keys[7], hidden_dim + feat1, hidden_dim)
    # cat order is (embedding, f_flat) -> rows [0:hidden] = emb, rows [hidden:] = f_flat
    params["rv1"] = (wr1[:hidden_dim], wr1[hidden_dim:], br1)
    params["rv2"] = linear(keys[8], hidden_dim, hidden_dim)
    params["rv3"] = linear(keys[9], hidden_dim, feat2)
    return params


def pack_params(params, latent_dim, input_dim, hidden_dim):
    """Coalesce all weights/biases into two packed bf16 buffers + static offsets."""
    chw = math.prod(input_dim[1:])
    feat2 = math.prod(input_dim[2:])

    entries32 = [("w1", latent_dim), ("b1", 1)]
    for i in range(2, 7):
        entries32 += [(f"w{i}", hidden_dim), (f"b{i}", 1)]
    entries32 += [("wr1a", hidden_dim), ("wr1b", chw), ("br1", 1),
                  ("wr2", hidden_dim), ("br2", 1)]
    off32, tot32 = _layout(entries32)

    off256, tot256 = _layout([("wr3", hidden_dim), ("br3", 1),
                              ("wk", hidden_dim), ("bk", 1)])

    wp32 = jnp.zeros((tot32, hidden_dim), jnp.float32)
    wp256 = jnp.zeros((tot256, feat2), jnp.float32)

    def put(buf, off, name, arr):
        o, r = off[name]
        return buf.at[o:o + r, :].set(arr.reshape(r, -1))

    for i, (w, b) in enumerate(params["net"], start=1):
        wp32 = put(wp32, off32, f"w{i}", w)
        wp32 = put(wp32, off32, f"b{i}", b)
    wr1a, wr1b, br1 = params["rv1"]
    wp32 = put(wp32, off32, "wr1a", wr1a)
    wp32 = put(wp32, off32, "wr1b", wr1b)
    wp32 = put(wp32, off32, "br1", br1)
    wr2, br2 = params["rv2"]
    wp32 = put(wp32, off32, "wr2", wr2)
    wp32 = put(wp32, off32, "br2", br2)

    wr3, br3 = params["rv3"]
    wk, bk = params["k"]
    wp256 = put(wp256, off256, "wr3", wr3)
    wp256 = put(wp256, off256, "br3", br3)
    # Fold *0.001 into the k head and replicate over the H*W lanes so the
    # kernel's k matmul directly produces the broadcast, lane-dense k.
    wp256 = put(wp256, off256, "wk", jnp.tile(wk * 1e-3, (1, feat2)))
    wp256 = put(wp256, off256, "bk", jnp.tile(bk * 1e-3, (1, feat2)))

    return {"wp32": wp32.astype(jnp.bfloat16),
            "wp256": wp256.astype(jnp.bfloat16),
            "off32": off32, "off256": off256}


def context_to_params_forward(t, f, context, packed, input_dim):
    del t  # `t` is unused in the PyTorch forward as well
    B = f.shape[0]
    H, W = input_dim[2], input_dim[3]
    feat2 = H * W
    chw = math.prod(input_dim[1:])
    latent_dim = context.shape[1]

    f_flat = f.reshape(B, -1).astype(jnp.bfloat16)   # == f.view(B, -1), NCHW row-major
    ctx = context.astype(jnp.bfloat16)
    wp32, wp256 = packed["wp32"], packed["wp256"]

    # Batch tile: whole batch when small; cap so a large batch becomes a
    # parallel grid axis (sharded across v7x's two TensorCores).
    bm = B
    for cand in (256, 128, 64, 32, 16):
        if B % cand == 0:
            bm = cand
            break
    grid = (B // bm,)

    kernel = _build_kernel(packed["off32"], packed["off256"])
    row_spec = pl.BlockSpec((bm, feat2), lambda i: (i, 0))

    k_b, rv = pl.pallas_call(
        kernel,
        out_shape=(jax.ShapeDtypeStruct((B, feat2), jnp.float32),
                   jax.ShapeDtypeStruct((B, feat2), jnp.float32)),
        grid_spec=pltpu.PrefetchScalarGridSpec(
            num_scalar_prefetch=0,
            grid=grid,
            in_specs=[
                pl.BlockSpec((bm, latent_dim), lambda i: (i, 0)),
                pl.BlockSpec((bm, chw), lambda i: (i, 0)),
                pl.BlockSpec(wp32.shape, lambda i: (0, 0)),   # weights stay resident
                pl.BlockSpec(wp256.shape, lambda i: (0, 0)),
            ],
            out_specs=(row_spec, row_spec),
        ),
        compiler_params=pltpu.CompilerParams(
            dimension_semantics=("parallel",)),
    )(ctx, f_flat, wp32, wp256)

    # Glue: pure reshape + stack (k is already broadcast & lane-dense).
    k_exp = k_b.reshape(B, H, W)
    Rv = rv.reshape(B, H, W)
    return jnp.stack((k_exp, Rv), axis=3)                     # (B, H, W, 2)


def _reference_forward(t, f, context, params, input_dim):
    """Pure-JAX reference mimicking the kernel's bf16 quantization (f32 accumulation)."""
    del t
    B = f.shape[0]
    H, W = input_dim[2], input_dim[3]

    def q(a):
        return a.astype(jnp.bfloat16).astype(jnp.float32)

    def lin(x, w, b):
        return jnp.dot(q(x), q(w), preferred_element_type=jnp.float32) + q(b)

    h = context
    for i, (w, b) in enumerate(params["net"]):
        h = lin(h, w, b)
        if i < 5:
            h = jnp.maximum(h, 0.0)
    emb = h

    wk, bk = params["k"]
    k = jnp.dot(q(emb), q(wk * 1e-3), preferred_element_type=jnp.float32) + q(bk * 1e-3)
    k = jnp.broadcast_to(k[:, :, None], (B, H, W))

    wr1a, wr1b, br1 = params["rv1"]
    f_flat = f.reshape(B, -1)
    r = jnp.maximum(jnp.dot(q(emb), q(wr1a), preferred_element_type=jnp.float32)
                    + jnp.dot(q(f_flat), q(wr1b), preferred_element_type=jnp.float32)
                    + q(br1), 0.0)
    w2, b2 = params["rv2"]
    r = jnp.maximum(lin(r, w2, b2), 0.0)
    w3, b3 = params["rv3"]
    rv = lin(r, w3, b3).reshape(B, H, W)
    return jnp.stack((k, rv), axis=3)


if __name__ == "__main__":
    latent_dim = 8
    hidden_dim = 32
    input_dim = (2, 4, 16, 16)   # (B, C, H, W)
    B, C, H, W = input_dim

    root = jax.random.PRNGKey(0)
    kf, kc, kp = jax.random.split(root, 3)
    f = jax.random.normal(kf, (B, C, H, W), dtype=jnp.float32)
    context = jax.random.normal(kc, (B, latent_dim), dtype=jnp.float32)
    t = jnp.float32(0.0)

    params = init_params(kp, latent_dim, input_dim, hidden_dim)
    packed = pack_params(params, latent_dim, input_dim, hidden_dim)

    res = context_to_params_forward(t, f, context, packed, input_dim)
    res = jax.block_until_ready(res)
    assert res.shape == (B, H, W, 2), res.shape
    assert bool(jnp.all(jnp.isfinite(res)))

    # Sanity-check wiring (packed offsets, concat fold, k broadcast) against a
    # pure-JAX reference using the same bf16 quantization.
    ref = _reference_forward(t, f, context, params, input_dim)
    max_diff = float(jnp.max(jnp.abs(res - ref)))
    assert bool(jnp.allclose(res, ref, rtol=2e-2, atol=1e-4)), max_diff

    print("KERNEL_OK")
</pallas_src>

<mosaic_0001>
module attributes {stable_mosaic.version = 11 : i64} {
  func.func @kernel(%arg0: i32, %arg1: memref<2x8xbf16, #tpu.memory_space<vmem>>, %arg2: memref<2x1024xbf16, #tpu.memory_space<vmem>>, %arg3: memref<1392x32xbf16, #tpu.memory_space<vmem>>, %arg4: memref<96x256xbf16, #tpu.memory_space<vmem>>, %arg5: memref<2x256xf32, #tpu.memory_space<vmem>>, %arg6: memref<2x256xf32, #tpu.memory_space<vmem>>) attributes {dimension_semantics = [#tpu.dimension_semantics<parallel>], iteration_bounds = array<i64: 1>, scalar_prefetch = 0 : i64, scratch_operands = 0 : i64, tpu.core_type = #tpu.core_type<tc>, window_params = [{transform_indices = @transform_0, window_bounds = array<i64: 2, 8>}, {transform_indices = @transform_1, window_bounds = array<i64: 2, 1024>}, {pipeline_mode = #tpu.pipeline_mode<synchronous>, transform_indices = @transform_2, window_bounds = array<i64: 1392, 32>}, {pipeline_mode = #tpu.pipeline_mode<synchronous>, transform_indices = @transform_3, window_bounds = array<i64: 96, 256>}, {transform_indices = @transform_4, window_bounds = array<i64: 2, 256>}, {transform_indices = @transform_5, window_bounds = array<i64: 2, 256>}]} {
    %c0 = arith.constant 0 : index
    %c0_0 = arith.constant 0 : index
    %0 = vector.load %arg1[%c0, %c0_0] : memref<2x8xbf16, #tpu.memory_space<vmem>>, vector<2x8xbf16>
    %c0_1 = arith.constant 0 : index
    %c0_2 = arith.constant 0 : index
    %1 = vector.load %arg3[%c0_1, %c0_2] : memref<1392x32xbf16, #tpu.memory_space<vmem>>, vector<8x32xbf16>
    %cst = arith.constant dense<0.000000e+00> : vector<2x32xf32>
    %2 = tpu.matmul %0, %1, %cst {dimension_numbers = #tpu.dot_dimension_numbers<[1], [0], [0], [1], [0, 0, 1, 1], [], []>} : vector<2x8xbf16>, vector<8x32xbf16>, vector<2x32xf32> -> vector<2x32xf32>
    %c16 = arith.constant 16 : index
    %c0_3 = arith.constant 0 : index
    %3 = vector.load %arg3[%c16, %c0_3] : memref<1392x32xbf16, #tpu.memory_space<vmem>>, vector<1x32xbf16>
    %4 = arith.extf %3 : vector<1x32xbf16> to vector<1x32xf32>
    %5 = vector.broadcast %4 : vector<1x32xf32> to vector<2x32xf32>
    %6 = arith.addf %2, %5 : vector<2x32xf32>
    %cst_4 = arith.constant 0.000000e+00 : f32
    %7 = vector.broadcast %cst_4 : f32 to vector<2x32xf32>
    %8 = arith.maximumf %6, %7 : vector<2x32xf32>
    %9 = arith.truncf %8 : vector<2x32xf32> to vector<2x32xbf16>
    %c32 = arith.constant 32 : index
    %c0_5 = arith.constant 0 : index
    %10 = vector.load %arg3[%c32, %c0_5] : memref<1392x32xbf16, #tpu.memory_space<vmem>>, vector<32x32xbf16>
    %cst_6 = arith.constant dense<0.000000e+00> : vector<2x32xf32>
    %11 = tpu.matmul %9, %10, %cst_6 {dimension_numbers = #tpu.dot_dimension_numbers<[1], [0], [0], [1], [0, 0, 1, 1], [], []>} : vector<2x32xbf16>, vector<32x32xbf16>, vector<2x32xf32> -> vector<2x32xf32>
    %c64 = arith.constant 64 : index
    %c0_7 = arith.constant 0 : index
    %12 = vector.load %arg3[%c64, %c0_7] : memref<1392x32xbf16, #tpu.memory_space<vmem>>, vector<1x32xbf16>
    %13 = arith.extf %12 : vector<1x32xbf16> to vector<1x32xf32>
    %14 = vector.broadcast %13 : vector<1x32xf32> to vector<2x32xf32>
    %15 = arith.addf %11, %14 : vector<2x32xf32>
    %cst_8 = arith.constant 0.000000e+00 : f32
    %16 = vector.broadcast %cst_8 : f32 to vector<2x32xf32>
    %17 = arith.maximumf %15, %16 : vector<2x32xf32>
    %18 = arith.truncf %17 : vector<2x32xf32> to vector<2x32xbf16>
    %c80 = arith.constant 80 : index
    %c0_9 = arith.constant 0 : index
    %19 = vector.load %arg3[%c80, %c0_9] : memref<1392x32xbf16, #tpu.memory_space<vmem>>, vector<32x32xbf16>
    %cst_10 = arith.constant dense<0.000000e+00> : vector<2x32xf32>
    %20 = tpu.matmul %18, %19, %cst_10 {dimension_numbers = #tpu.dot_dimension_numbers<[1], [0], [0], [1], [0, 0, 1, 1], [], []>} : vector<2x32xbf16>, vector<32x32xbf16>, vector<2x32xf32> -> vector<2x32xf32>
    %c112 = arith.constant 112 : index
    %c0_11 = arith.constant 0 : index
    %21 = vector.load %arg3[%c112, %c0_11] : memref<1392x32xbf16, #tpu.memory_space<vmem>>, vector<1x32xbf16>
    %22 = arith.extf %21 : vector<1x32xbf16> to vector<1x32xf32>
    %23 = vector.broadcast %22 : vector<1x32xf32> to vector<2x32xf32>
    %24 = arith.addf %20, %23 : vector<2x32xf32>
    %cst_12 = arith.constant 0.000000e+00 : f32
    %25 = vector.broadcast %cst_12 : f32 to vector<2x32xf32>
    %26 = arith.maximumf %24, %25 : vector<2x32xf32>
    %27 = arith.truncf %26 : vector<2x32xf32> to vector<2x32xbf16>
    %c128 = arith.constant 128 : index
    %c0_13 = arith.constant 0 : index
    %28 = vector.load %arg3[%c128, %c0_13] : memref<1392x32xbf16, #tpu.memory_space<vmem>>, vector<32x32xbf16>
    %cst_14 = arith.constant dense<0.000000e+00> : vector<2x32xf32>
    %29 = tpu.matmul %27, %28, %cst_14 {dimension_numbers = #tpu.dot_dimension_numbers<[1], [0], [0], [1], [0, 0, 1, 1], [], []>} : vector<2x32xbf16>, vector<32x32xbf16>, vector<2x32xf32> -> vector<2x32xf32>
    %c160 = arith.constant 160 : index
    %c0_15 = arith.constant 0 : index
    %30 = vector.load %arg3[%c160, %c0_15] : memref<1392x32xbf16, #tpu.memory_space<vmem>>, vector<1x32xbf16>
    %31 = arith.extf %30 : vector<1x32xbf16> to vector<1x32xf32>
    %32 = vector.broadcast %31 : vector<1x32xf32> to vector<2x32xf32>
    %33 = arith.addf %29, %32 : vector<2x32xf32>
    %cst_16 = arith.constant 0.000000e+00 : f32
    %34 = vector.broadcast %cst_16 : f32 to vector<2x32xf32>
    %35 = arith.maximumf %33, %34 : vector<2x32xf32>
    %36 = arith.truncf %35 : vector<2x32xf32> to vector<2x32xbf16>
    %c176 = arith.constant 176 : index
    %c0_17 = arith.constant 0 : index
    %37 = vector.load %arg3[%c176, %c0_17] : memref<1392x32xbf16, #tpu.memory_space<vmem>>, vector<32x32xbf16>
    %cst_18 = arith.constant dense<0.000000e+00> : vector<2x32xf32>
    %38 = tpu.matmul %36, %37, %cst_18 {dimension_numbers = #tpu.dot_dimension_numbers<[1], [0], [0], [1], [0, 0, 1, 1], [], []>} : vector<2x32xbf16>, vector<32x32xbf16>, vector<2x32xf32> -> vector<2x32xf32>
    %c208 = arith.constant 208 : index
    %c0_19 = arith.constant 0 : index
    %39 = vector.load %arg3[%c208, %c0_19] : memref<1392x32xbf16, #tpu.memory_space<vmem>>, vector<1x32xbf16>
    %40 = arith.extf %39 : vector<1x32xbf16> to vector<1x32xf32>
    %41 = vector.broadcast %40 : vector<1x32xf32> to vector<2x32xf32>
    %42 = arith.addf %38, %41 : vector<2x32xf32>
    %cst_20 = arith.constant 0.000000e+00 : f32
    %43 = vector.broadcast %cst_20 : f32 to vector<2x32xf32>
    %44 = arith.maximumf %42, %43 : vector<2x32xf32>
    %45 = arith.truncf %44 : vector<2x32xf32> to vector<2x32xbf16>
    %c224 = arith.constant 224 : index
    %c0_21 = arith.constant 0 : index
    %46 = vector.load %arg3[%c224, %c0_21] : memref<1392x32xbf16, #tpu.memory_space<vmem>>, vector<32x32xbf16>
    %cst_22 = arith.constant dense<0.000000e+00> : vector<2x32xf32>
    %47 = tpu.matmul %45, %46, %cst_22 {dimension_numbers = #tpu.dot_dimension_numbers<[1], [0], [0], [1], [0, 0, 1, 1], [], []>} : vector<2x32xbf16>, vector<32x32xbf16>, vector<2x32xf32> -> vector<2x32xf32>
    %c256 = arith.constant 256 : index
    %c0_23 = arith.constant 0 : index
    %48 = vector.load %arg3[%c256, %c0_23] : memref<1392x32xbf16, #tpu.memory_space<vmem>>, vector<1x32xbf16>
    %49 = arith.extf %48 : vector<1x32xbf16> to vector<1x32xf32>
    %50 = vector.broadcast %49 : vector<1x32xf32> to vector<2x32xf32>
    %51 = arith.addf %47, %50 : vector<2x32xf32>
    %52 = arith.truncf %51 : vector<2x32xf32> to vector<2x32xbf16>
    %c48 = arith.constant 48 : index
    %c0_24 = arith.constant 0 : index
    %53 = vector.load %arg4[%c48, %c0_24] : memref<96x256xbf16, #tpu.memory_space<vmem>>, vector<32x256xbf16>
    %cst_25 = arith.constant dense<0.000000e+00> : vector<2x256xf32>
    %54 = tpu.matmul %52, %53, %cst_25 {dimension_numbers = #tpu.dot_dimension_numbers<[1], [0], [0], [1], [0, 0, 1, 1], [], []>} : vector<2x32xbf16>, vector<32x256xbf16>, vector<2x256xf32> -> vector<2x256xf32>
    %c80_26 = arith.constant 80 : index
    %c0_27 = arith.constant 0 : index
    %55 = vector.load %arg4[%c80_26, %c0_27] : memref<96x256xbf16, #tpu.memory_space<vmem>>, vector<1x256xbf16>
    %56 = arith.extf %55 : vector<1x256xbf16> to vector<1x256xf32>
    %57 = vector.broadcast %56 : vector<1x256xf32> to vector<2x256xf32>
    %58 = arith.addf %54, %57 : vector<2x256xf32>
    %c272 = arith.constant 272 : index
    %c0_28 = arith.constant 0 : index
    %59 = vector.load %arg3[%c272, %c0_28] : memref<1392x32xbf16, #tpu.memory_space<vmem>>, vector<32x32xbf16>
    %cst_29 = arith.constant dense<0.000000e+00> : vector<2x32xf32>
    %60 = tpu.matmul %52, %59, %cst_29 {dimension_numbers = #tpu.dot_dimension_numbers<[1], [0], [0], [1], [0, 0, 1, 1], [], []>} : vector<2x32xbf16>, vector<32x32xbf16>, vector<2x32xf32> -> vector<2x32xf32>
    %c0_30 = arith.constant 0 : index
    %c0_31 = arith.constant 0 : index
    %61 = vector.load %arg2[%c0_30, %c0_31] : memref<2x1024xbf16, #tpu.memory_space<vmem>>, vector<2x1024xbf16>
    %c304 = arith.constant 304 : index
    %c0_32 = arith.constant 0 : index
    %62 = vector.load %arg3[%c304, %c0_32] : memref<1392x32xbf16, #tpu.memory_space<vmem>>, vector<1024x32xbf16>
    %cst_33 = arith.constant dense<0.000000e+00> : vector<2x32xf32>
    %63 = tpu.matmul %61, %62, %cst_33 {dimension_numbers = #tpu.dot_dimension_numbers<[1], [0], [0], [1], [0, 0, 1, 1], [], []>} : vector<2x1024xbf16>, vector<1024x32xbf16>, vector<2x32xf32> -> vector<2x32xf32>
    %64 = arith.addf %60, %63 : vector<2x32xf32>
    %c1328 = arith.constant 1328 : index
    %c0_34 = arith.constant 0 : index
    %65 = vector.load %arg3[%c1328, %c0_34] : memref<1392x32xbf16, #tpu.memory_space<vmem>>, vector<1x32xbf16>
    %66 = arith.extf %65 : vector<1x32xbf16> to vector<1x32xf32>
    %67 = vector.broadcast %66 : vector<1x32xf32> to vector<2x32xf32>
    %68 = arith.addf %64, %67 : vector<2x32xf32>
    %cst_35 = arith.constant 0.000000e+00 : f32
    %69 = vector.broadcast %cst_35 : f32 to vector<2x32xf32>
    %70 = arith.maximumf %68, %69 : vector<2x32xf32>
    %71 = arith.truncf %70 : vector<2x32xf32> to vector<2x32xbf16>
    %c1344 = arith.constant 1344 : index
    %c0_36 = arith.constant 0 : index
    %72 = vector.load %arg3[%c1344, %c0_36] : memref<1392x32xbf16, #tpu.memory_space<vmem>>, vector<32x32xbf16>
    %cst_37 = arith.constant dense<0.000000e+00> : vector<2x32xf32>
    %73 = tpu.matmul %71, %72, %cst_37 {dimension_numbers = #tpu.dot_dimension_numbers<[1], [0], [0], [1], [0, 0, 1, 1], [], []>} : vector<2x32xbf16>, vector<32x32xbf16>, vector<2x32xf32> -> vector<2x32xf32>
    %c1376 = arith.constant 1376 : index
    %c0_38 = arith.constant 0 : index
    %74 = vector.load %arg3[%c1376, %c0_38] : memref<1392x32xbf16, #tpu.memory_space<vmem>>, vector<1x32xbf16>
    %75 = arith.extf %74 : vector<1x32xbf16> to vector<1x32xf32>
    %76 = vector.broadcast %75 : vector<1x32xf32> to vector<2x32xf32>
    %77 = arith.addf %73, %76 : vector<2x32xf32>
    %cst_39 = arith.constant 0.000000e+00 : f32
    %78 = vector.broadcast %cst_39 : f32 to vector<2x32xf32>
    %79 = arith.maximumf %77, %78 : vector<2x32xf32>
    %80 = arith.truncf %79 : vector<2x32xf32> to vector<2x32xbf16>
    %c0_40 = arith.constant 0 : index
    %c0_41 = arith.constant 0 : index
    %81 = vector.load %arg4[%c0_40, %c0_41] : memref<96x256xbf16, #tpu.memory_space<vmem>>, vector<32x256xbf16>
    %cst_42 = arith.constant dense<0.000000e+00> : vector<2x256xf32>
    %82 = tpu.matmul %80, %81, %cst_42 {dimension_numbers = #tpu.dot_dimension_numbers<[1], [0], [0], [1], [0, 0, 1, 1], [], []>} : vector<2x32xbf16>, vector<32x256xbf16>, vector<2x256xf32> -> vector<2x256xf32>
    %c32_43 = arith.constant 32 : index
    %c0_44 = arith.constant 0 : index
    %83 = vector.load %arg4[%c32_43, %c0_44] : memref<96x256xbf16, #tpu.memory_space<vmem>>, vector<1x256xbf16>
    %84 = arith.extf %83 : vector<1x256xbf16> to vector<1x256xf32>
    %85 = vector.broadcast %84 : vector<1x256xf32> to vector<2x256xf32>
    %86 = arith.addf %82, %85 : vector<2x256xf32>
    %c0_45 = arith.constant 0 : index
    %c0_46 = arith.constant 0 : index
    %87 = vector.load %arg5[%c0_45, %c0_46] : memref<2x256xf32, #tpu.memory_space<vmem>>, vector<2x256xf32>
    tpu.vector_store %arg5[%c0_45, %c0_46], %58 {strides = array<i32>} : memref<2x256xf32, #tpu.memory_space<vmem>>, vector<2x256xf32>,
    %c0_47 = arith.constant 0 : index
    %c0_48 = arith.constant 0 : index
    %88 = vector.load %arg6[%c0_47, %c0_48] : memref<2x256xf32, #tpu.memory_space<vmem>>, vector<2x256xf32>
    tpu.vector_store %arg6[%c0_47, %c0_48], %86 {strides = array<i32>} : memref<2x256xf32, #tpu.memory_space<vmem>>, vector<2x256xf32>,
    return
  }
  func.func @transform_0(%arg0: i32) -> (i32, i32) {
    %c0_i32 = arith.constant 0 : i32
    %c0_i32_0 = arith.constant 0 : i32
    return %arg0, %c0_i32 : i32, i32
  }
  func.func @transform_1(%arg0: i32) -> (i32, i32) {
    %c0_i32 = arith.constant 0 : i32
    %c0_i32_0 = arith.constant 0 : i32
    return %arg0, %c0_i32 : i32, i32
  }
  func.func @transform_2(%arg0: i32) -> (i32, i32) {
    %c0_i32 = arith.constant 0 : i32
    %c0_i32_0 = arith.constant 0 : i32
    %c0_i32_1 = arith.constant 0 : i32
    return %c0_i32, %c0_i32_0 : i32, i32
  }
  func.func @transform_3(%arg0: i32) -> (i32, i32) {
    %c0_i32 = arith.constant 0 : i32
    %c0_i32_0 = arith.constant 0 : i32
    %c0_i32_1 = arith.constant 0 : i32
    return %c0_i32, %c0_i32_0 : i32, i32
  }
  func.func @transform_4(%arg0: i32) -> (i32, i32) {
    %c0_i32 = arith.constant 0 : i32
    %c0_i32_0 = arith.constant 0 : i32
    return %arg0, %c0_i32 : i32, i32
  }
  func.func @transform_5(%arg0: i32) -> (i32, i32) {
    %c0_i32 = arith.constant 0 : i32
    %c0_i32_0 = arith.constant 0 : i32
    return %arg0, %c0_i32 : i32, i32
  }
}

</mosaic_0001>

<bundles_post_ra>
// kernel: tpu_custom_call.1
= control target key start
LH: loop header
LB: loop body
LE: loop exit
PB: predicated region body
PF: predicated region fallthrough
CT: control target
= control target key end

     0   :  { %11 = vsyncpa [#allocation3], 0  ;;  %vm34_vm0 = vcmask 1043456   ;;  %v1900_v1 = vmov 0.0   ;;  %vm1901_vm1 = vmmov 0   ;;  %vm30_vm2 = vcmask 64512   ;;  %s2328_s0 = inlined_call_operand.vmem [shape: bf16[2,8], index: 0, kind: input, shape index: {}]   ;;  %s2329_s1 = inlined_call_operand.vmem [shape: bf16[2,1024], index: 1, kind: input, shape index: {}]   ;;  %s2330_s2 = inlined_call_operand.vmem [shape: bf16[1392,32], index: 2, kind: input, shape index: {}]   ;;  %s2331_s3 = inlined_call_operand.vmem [shape: bf16[96,256], index: 3, kind: input, shape index: {}]   ;;  %s2332_s4 = inlined_call_operand.hbm [shape: f32[2,256], index: 4, kind: output, shape index: {0}]   ;;  %s2333_s5 = inlined_call_operand.hbm [shape: f32[2,256], index: 5, kind: output, shape index: {1}]  }
   0x1   :  { %v23_v0 = vld [vmem:[%s2330_s2] sm:$0xf]  ;;  %1697 = vmatprep.subr.bf16.mxu0 %v1900_v1  ;;  %1699 = vmatprep.mubr.msk.bf16.mxu0 %vm1901_vm1, %v1900_v1 }
   0x2   :  { %v36_v2 = vsel %vm34_vm0, %v23_v0, 0  ;;  %v22_v3 = vld [vmem:[%s2328_s0] sm:$0x1]  ;;  %1703 = vmatprep.subr.bf16.mxu1 %v1900_v1  ;;  %1707 = vmatprep.mubr.msk.bf16.mxu1 %vm1901_vm1, %v1900_v1 }
   0x3   :  { %1698 = vmatpush3.bf16.msra.mxu0 %v36_v2 }
   0x4   :  { %1711 = vmatprep.subr.bf16.mxu0 %v1900_v1 }
   0x6   :  { %1700 = vmatmul.mubr.msk.bf16.vlgmr.msra.gmra.mxu0 %vm30_vm2, %v22_v3 }
   0x7   :  { %1715 = vmatprep.mubr.msk.bf16.mxu0 %vm1901_vm1, %v1900_v1 }
   0x8   :  { %12 = vsyncpa [#allocation5], 0  ;;  %v1765_v4 = vld [vmem:[%s2330_s2 + $0x18] sm:$0xff]   ;;  %v1766_v5 = vld [vmem:[%s2330_s2 + $0x10] sm:$0xff]   ;;  %v26_v7 = vlaneseq  ;;  %vm102_vm3 = vcmask 261120   ;;  %s1904_s25 = smov [#allocation2]  }
   0x9   :  { %1704 = vmatpush3.bf16.msra.mxu1 %v1765_v4  ;;  %v1767_v6 = vld [vmem:[%s2330_s2 + $0x30] sm:$0xff]   ;;  %v24_v9 = vld [vmem:[%s2330_s2 + $0x8] sm:$0x1]  ;;  %v84_v22 = vld [vmem:[%s2330_s2 + $0x20] sm:$0x1]  ;;  %s1466_s26 = sshll.u32 %s1904_s25, 4  ;;  %s1467_s26 = int_to_ptr.vmem [resolvable:$true] %s1466_s26 }
   0xa   :  { %1705 = vmatprep.subr.bf16.mxu1 %v1900_v1  ;;  %1712 = vmatpush3.bf16.msra.mxu0 %v1767_v6  ;;  %v1963_v8 = vshrl.u32 %v26_v7, 7  ;;  %v25_v10 = vunpack.c.l.bf16 %v24_v9  ;;  %v1768_v20 = vld [vmem:[%s2330_s2 + $0x28] sm:$0xff]   ;;  %v85_v23 = vunpack.c.l.bf16 %v84_v22  ;;  %v1770_v32 = vld [vmem:[%s2330_s2 + $0x40] sm:$0xff]   ;;  %v152_v34 = vld [vmem:[%s2330_s2 + $0x38] sm:$0x1]  ;;  %s1856_s27 = scalar_lea.vmem %s1467_s26, 64  ;;  %p1861_p1 = scmp.lt.s32.totalorder %s1467_s26, %s1467_s26 }
   0xb   :  { %1713 = vmatprep.subr.bf16.mxu0 %v1900_v1  ;;  %v1769_v21 = vld [vmem:[%s2330_s2 + $0x48] sm:$0xff]   ;;  %v1771_v33 = vld [vmem:[%s2330_s2 + $0x60] sm:$0xff]   ;;  %v153_v35 = vunpack.c.l.bf16 %v152_v34  ;;  %v1772_v44 = vld [vmem:[%s2330_s2 + $0x58] sm:$0xff]   ;;  %v1902_v60 = vmov 1966171168   ;;  %p1857_p0 = scmp.ne.s32.totalorder %s1467_s26, %s1856_s27  ;;  %p1862_p2 = scmp.lt.s32.totalorder %s1856_s27, %s1856_s27 }
   0xc   :  { %v1969_v11 = vsub.s32 0, %v1963_v8  ;;  %v1773_v45 = vld [vmem:[%s2330_s2 + $0x78] sm:$0xff]   ;;  %v219_v46 = vld [vmem:[%s2330_s2 + $0x50] sm:$0x1]  ;;  %v1807_v58 = vld [vmem:[%s2331_s3 + $0x40] ss:$8 sps:$4 sm:$0xff]   ;;  %v630_v61 = vunpack.c.l.s4 %v1902_v60 }
   0xd   :  { %1706 = vmatpush3.bf16.msra.mxu1 %v1766_v5  ;;  %v220_v47 = vunpack.c.l.bf16 %v219_v46  ;;  %v1774_v56 = vld [vmem:[%s2330_s2 + $0x70] sm:$0xff]   ;;  %v1809_v59 = vld [vmem:[%s2331_s3 + $0x44] ss:$8 sps:$4 sm:$0xff]   ;;  %v286_v63 = vld [vmem:[%s2330_s2 + $0x68] sm:$0x1]  ;;  %p1863_p3 = por %p1862_p2, %p1861_p1 }
   0xe   :  { %1719 = vmatprep.subr.bf16.mxu1 %v1900_v1  ;;  %v29_v12 = vrot.slane %v25_v10, %v1969_v11  ;;  %1714 = vmatpush3.bf16.msra.mxu0 %v1768_v20  ;;  %v89_v24 = vrot.slane %v85_v23, %v1969_v11  ;;  %v157_v36 = vrot.slane %v153_v35, %v1969_v11  ;;  %v1775_v57 = vld [vmem:[%s2330_s2 + $0x110] sm:$0xff]   ;;  %v631_v62 = vunpack.c.0.s8 %v630_v61  ;;  %v498_v3 = vld [vmem:[%s2329_s1] sm:$0xff]  ;;  %v1782_v22 = vld [vmem:[%s2330_s2 + $0xb8] sm:$0xff]  }
   0xf   :  { %1727 = vmatprep.subr.bf16.mxu0 %v1900_v1  ;;  %v224_v48 = vrot.slane %v220_v47, %v1969_v11  ;;  %v287_v2 = vunpack.c.l.bf16 %v286_v63  ;;  %v1780_v20 = vld [vmem:[%s2330_s2 + $0xc0] sm:$0xff]   ;;  %v1783_v23 = vld [vmem:[%s2330_s2 + $0xf0] sm:$0xff]   ;;  %v1801_v46 = vld [vmem:[%s2330_s2 + $0x1e8] sm:$0xff]   ;;  %p1864_p4 = pnand %p1863_p3, %p1857_p0 }
  0x10   :  { %v2033_v0 = vsub.s32 %v631_v62, %v1963_v8  ;;  %v1776_v8 = vld [vmem:[%s2330_s2 + $0xd0] sm:$0xff]   ;;  %v1802_v47 = vld [vmem:[%s2330_s2 + $0x1a8] sm:$0xff]  }
  0x11   :  { %v291_v5 = vrot.slane %v287_v2, %v1969_v11  ;;  %v1791_v34 = vld [vmem:[%s2330_s2 + $0x210] sm:$0xff]  }
  0x12   :  { %v635_v4 = vrot.slane %v498_v3, %v2033_v0  ;;  %v1817_v2 = vld [vmem:[%s2330_s2 + $0x150] sm:$0xff]  }
  0x14   :  { %v643_v7 = vcombine.high %v635_v4, %v635_v4  ;;  %v2095_v35 = vrot.slane %v635_v4, %v2033_v0 }
  0xc6   :  { %v72_v13 = vpop.f32.mrf.mxu0 }
  0xc7   :  { %v73_v14 = vadd.f32 %v72_v13, %v29_v12 }
  0xc8   :  { %v1701_v15 = vpop.f32.mrf.mxu0 }
  0xc9   :  { %v78_v16 = vmax.f32 %v73_v14, 0.0  ;;  %v2044_v14 = vrot.slane %v643_v7, %v2033_v0 }
  0xca   :  { %v75_v17 = vpop.f32.mrf.mxu0 }
  0xcb   :  { %v79_v18 = vpack.c.bf16 %v78_v16, %v78_v16  ;;  %v1777_v16 = vld [vmem:[%s2330_s2 + $0x108] sm:$0xff]  }
  0xcc   :  { %v1702_v19 = vpop.f32.mrf.mxu0 }
  0xcd   :  { %1708 = vmatmul.mubr.msk.bf16.vlgmr.msra.gmra.mxu1 %vm102_vm3, %v79_v18  ;;  %v1778_v18 = vld [vmem:[%s2330_s2 + $0xc8] sm:$0xff]   ;;  %v1779_v19 = vld [vmem:[%s2330_s2 + $0x100] sm:$0xff]  }
  0xce   :  { %1723 = vmatprep.mubr.msk.bf16.mxu1 %vm1901_vm1, %v1900_v1  ;;  %1720 = vmatpush3.bf16.msra.mxu1 %v1769_v21  ;;  %v1781_v21 = vld [vmem:[%s2330_s2 + $0xf8] sm:$0xff]  }
  0xcf   :  { %1721 = vmatprep.subr.bf16.mxu1 %v1900_v1 }
  0xd2   :  { %1722 = vmatpush3.bf16.msra.mxu1 %v1770_v32  ;;  %v1790_v32 = vld [vmem:[%s2330_s2 + $0x98] sm:$0xff]  }
  0xd3   :  { %1735 = vmatprep.subr.bf16.mxu1 %v1900_v1 }
 0x18d   :  { %v140_v25 = vpop.f32.mrf.mxu1 }
 0x18e   :  { %v141_v26 = vadd.f32 %v140_v25, %v89_v24  ;;  %v1784_v24 = vld [vmem:[%s2330_s2 + $0xb0] sm:$0xff]   ;;  %v1785_v25 = vld [vmem:[%s2330_s2 + $0xe8] sm:$0xff]  }
 0x18f   :  { %v1709_v27 = vpop.f32.mrf.mxu1 }
 0x190   :  { %v146_v28 = vmax.f32 %v141_v26, 0.0  ;;  %v1786_v26 = vld [vmem:[%s2330_s2 + $0xa8] sm:$0xff]   ;;  %v628_v27 = vcombine.high %v498_v3, %v498_v3  ;;  %v675_v3 = vcombine.high %v2044_v14, %v2044_v14 }
 0x191   :  { %v143_v29 = vpop.f32.mrf.mxu1 }
 0x192   :  { %v147_v30 = vpack.c.bf16 %v146_v28, %v146_v28  ;;  %v1787_v28 = vld [vmem:[%s2330_s2 + $0xe0] sm:$0xff]  }
 0x193   :  { %v1710_v31 = vpop.f32.mrf.mxu1  ;;  %v1788_v29 = vld [vmem:[%s2330_s2 + $0xa0] sm:$0xff]  }
 0x194   :  { %1716 = vmatmul.mubr.msk.bf16.vlgmr.msra.gmra.mxu0 %vm102_vm3, %v147_v30  ;;  %v642_v30 = vrot.slane %v628_v27, %v2033_v0  ;;  %v1789_v31 = vld [vmem:[%s2330_s2 + $0xd8] sm:$0xff]  }
 0x195   :  { %1731 = vmatprep.mubr.msk.bf16.mxu0 %vm1901_vm1, %v1900_v1  ;;  %1728 = vmatpush3.bf16.msra.mxu0 %v1771_v33 }
 0x196   :  { %1729 = vmatprep.subr.bf16.mxu0 %v1900_v1  ;;  %v644_v33 = vcombine.high %v642_v30, %v642_v30 }
 0x199   :  { %1730 = vmatpush3.bf16.msra.mxu0 %v1772_v44  ;;  %v1799_v44 = vld [vmem:[%s2330_s2 + $0x1f0] sm:$0xff]  }
 0x19a   :  { %465 = vmatprep.subr.bf16.mxu0 %v1809_v59  ;;  %v353_v59 = vld [vmem:[%s2330_s2 + $0x80] sm:$0x1] }
 0x19b   :  { %v354_v60 = vunpack.c.l.bf16 %v353_v59 }
 0x19d   :  { %v358_v61 = vrot.slane %v354_v60, %v1969_v11 }
 0x254   :  { %v207_v37 = vpop.f32.mrf.mxu0 }
 0x255   :  { %v208_v38 = vadd.f32 %v207_v37, %v157_v36  ;;  %v1792_v36 = vld [vmem:[%s2330_s2 + $0x1d0] sm:$0xff]   ;;  %v2101_v37 = vrot.slane %v644_v33, %v2033_v0  ;;  %v1836_v33 = vld [vmem:[%s2330_s2 + $0x280] sm:$0xff]  }
 0x256   :  { %v1717_v39 = vpop.f32.mrf.mxu0 }
 0x257   :  { %v213_v40 = vmax.f32 %v208_v38, 0.0  ;;  %v1793_v38 = vld [vmem:[%s2330_s2 + $0x208] sm:$0xff]  }
 0x258   :  { %v210_v41 = vpop.f32.mrf.mxu0  ;;  %v1794_v39 = vld [vmem:[%s2330_s2 + $0x1c8] sm:$0xff]  }
 0x259   :  { %v214_v42 = vpack.c.bf16 %v213_v40, %v213_v40  ;;  %v1795_v40 = vld [vmem:[%s2330_s2 + $0x200] sm:$0xff]  }
 0x25a   :  { %v1718_v43 = vpop.f32.mrf.mxu0  ;;  %v1796_v41 = vld [vmem:[%s2330_s2 + $0x1c0] sm:$0xff]  }
 0x25b   :  { %1724 = vmatmul.mubr.msk.bf16.vlgmr.msra.gmra.mxu1 %vm102_vm3, %v214_v42  ;;  %v1797_v42 = vld [vmem:[%s2330_s2 + $0x1f8] sm:$0xff]  }
 0x25c   :  { %1739 = vmatprep.mubr.msk.bf16.mxu1 %vm1901_vm1, %v1900_v1  ;;  %1736 = vmatpush3.bf16.msra.mxu1 %v1773_v45  ;;  %v1798_v43 = vld [vmem:[%s2330_s2 + $0x1b8] sm:$0xff]   ;;  %v1800_v45 = vld [vmem:[%s2330_s2 + $0x1b0] sm:$0xff]  }
 0x25d   :  { %1737 = vmatprep.subr.bf16.mxu1 %v1900_v1 }
 0x260   :  { %1738 = vmatpush3.bf16.msra.mxu1 %v1774_v56  ;;  %v1815_v56 = vld [vmem:[%s2330_s2 + $0x88] sm:$0xff]  }
 0x261   :  { %1603 = vmatprep.subr.bf16.mxu1 %v1775_v57  ;;  %v1816_v57 = vld [vmem:[%s2330_s2 + $0x190] sm:$0xff]  }
 0x31b   :  { %v274_v49 = vpop.f32.mrf.mxu1 }
 0x31c   :  { %v275_v50 = vadd.f32 %v274_v49, %v224_v48  ;;  %v1803_v48 = vld [vmem:[%s2330_s2 + $0x1e0] sm:$0xff]  }
 0x31d   :  { %v1725_v51 = vpop.f32.mrf.mxu1  ;;  %v1804_v49 = vld [vmem:[%s2330_s2 + $0x1a0] sm:$0xff]  }
 0x31e   :  { %v280_v52 = vmax.f32 %v275_v50, 0.0  ;;  %v1805_v50 = vld [vmem:[%s2330_s2 + $0x1d8] sm:$0xff]  }
 0x31f   :  { %v277_v53 = vpop.f32.mrf.mxu1  ;;  %v1806_v51 = vld [vmem:[%s2330_s2 + $0x198] sm:$0xff]  }
 0x320   :  { %v281_v54 = vpack.c.bf16 %v280_v52, %v280_v52  ;;  %v2148_v52 = vrot.slane %v642_v30, %v2033_v0  ;;  %v1811_v53 = vld [vmem:[%s2330_s2 + $0x90] sm:$0xff]  }
 0x321   :  { %v1726_v55 = vpop.f32.mrf.mxu1 }
 0x322   :  { %1732 = vmatmul.mubr.msk.bf16.vlgmr.msra.gmra.mxu0 %vm102_vm3, %v281_v54  ;;  %v1814_v54 = vld [vmem:[%s2331_s3 + $0x34] ss:$8 sps:$4 sm:$0xff]   ;;  %v1812_v55 = vld [vmem:[%s2331_s3 + $0x30] ss:$8 sps:$4 sm:$0xff]  }
 0x323   :  { %466 = vmatpush1.bf16.msra.mxu0 %v1807_v58  ;;  %v1903_v58 = vmov 0  }
 0x324   :  { %467 = vmatprep.subr.bf16.mxu0 %v1814_v54  ;;  %485 = vmatprep.mubr.bf16.mxu0 %v1903_v58  ;;  %v1852_v54 = vld [vmem:[%s2331_s3 + $0x14] ss:$8 sps:$4 sm:$0xff]  }
 0x327   :  { %468 = vmatpush1.bf16.msra.mxu0 %v1812_v55  ;;  %v419_v55 = vld [vmem:[%s2331_s3 + $0x50] sm:$0x11] }
 0x328   :  { %1625 = vmatprep.subr.bf16.mxu0 %v1816_v57 }
 0x3e2   :  { %v341_v6 = vpop.f32.mrf.mxu0 }
 0x3e3   :  { %v342_v9 = vadd.f32 %v341_v6, %v291_v5  ;;  %v1818_v5 = vld [vmem:[%s2330_s2 + $0x188] sm:$0xff]  }
 0x3e4   :  { %v1733_v10 = vpop.f32.mrf.mxu0 }
 0x3e5   :  { %v347_v12 = vmax.f32 %v342_v9, 0.0  ;;  %v1819_v9 = vld [vmem:[%s2330_s2 + $0x148] sm:$0xff]   ;;  %v1820_v10 = vld [vmem:[%s2330_s2 + $0x180] sm:$0xff]  }
 0x3e6   :  { %v344_v13 = vpop.f32.mrf.mxu0 }
 0x3e7   :  { %v348_v15 = vpack.c.bf16 %v347_v12, %v347_v12  ;;  %v1821_v12 = vld [vmem:[%s2330_s2 + $0x140] sm:$0xff]   ;;  %v1822_v13 = vld [vmem:[%s2330_s2 + $0x178] sm:$0xff]  }
 0x3e8   :  { %v1734_v17 = vpop.f32.mrf.mxu0 }
 0x3e9   :  { %1740 = vmatmul.mubr.msk.bf16.vlgmr.msra.gmra.mxu1 %vm102_vm3, %v348_v15  ;;  %v1825_v15 = vld [vmem:[%s2330_s2 + $0x130] sm:$0xff]   ;;  %v1827_v17 = vld [vmem:[%s2330_s2 + $0x128] sm:$0xff]  }
 0x3ea   :  { %1604 = vmatpush3.bf16.msra.mxu1 %v1776_v8  ;;  %1101 = vmatprep.mubr.bf16.mxu1 %v2044_v14  ;;  %v1823_v8 = vld [vmem:[%s2330_s2 + $0x138] sm:$0xff]   ;;  %v1824_v14 = vld [vmem:[%s2330_s2 + $0x170] sm:$0xff]  }
 0x3eb   :  { %1605 = vmatprep.subr.bf16.mxu1 %v1777_v16  ;;  %v1826_v16 = vld [vmem:[%s2330_s2 + $0x168] sm:$0xff]  }
 0x3ee   :  { %1606 = vmatpush3.bf16.msra.mxu1 %v1778_v18  ;;  %v1828_v18 = vld [vmem:[%s2330_s2 + $0x160] sm:$0xff]  }
 0x3ef   :  { %1607 = vmatprep.subr.bf16.mxu1 %v1779_v19  ;;  %v1829_v19 = vld [vmem:[%s2330_s2 + $0x120] sm:$0xff]  }
 0x3f2   :  { %1608 = vmatpush3.bf16.msra.mxu1 %v1780_v20  ;;  %v1830_v20 = vld [vmem:[%s2330_s2 + $0x158] sm:$0xff]  }
 0x3f3   :  { %1609 = vmatprep.subr.bf16.mxu1 %v1781_v21  ;;  %v1831_v21 = vld [vmem:[%s2330_s2 + $0x118] sm:$0xff]  }
 0x3f6   :  { %1610 = vmatpush3.bf16.msra.mxu1 %v1782_v22  ;;  %v1832_v22 = vld [vmem:[%s2330_s2 + $0x290] sm:$0xff]  }
 0x3f7   :  { %1611 = vmatprep.subr.bf16.mxu1 %v1783_v23 }
 0x3fa   :  { %1612 = vmatpush3.bf16.msra.mxu1 %v1784_v24  ;;  %v673_v24 = vcombine.high %v2095_v35, %v2095_v35 }
 0x3fb   :  { %1613 = vmatprep.subr.bf16.mxu1 %v1785_v25  ;;  %v1833_v25 = vld [vmem:[%s2330_s2 + $0x250] sm:$0xff]  }
 0x3fe   :  { %1614 = vmatpush3.bf16.msra.mxu1 %v1786_v26  ;;  %v676_v26 = vcombine.high %v2101_v37, %v2101_v37 }
 0x3ff   :  { %1615 = vmatprep.subr.bf16.mxu1 %v1787_v28  ;;  %v1834_v28 = vld [vmem:[%s2330_s2 + $0x288] sm:$0xff]  }
 0x402   :  { %1616 = vmatpush3.bf16.msra.mxu1 %v1788_v29 }
 0x403   :  { %1617 = vmatprep.subr.bf16.mxu1 %v1789_v31  ;;  %v1835_v31 = vld [vmem:[%s2330_s2 + $0x248] sm:$0xff]  }
 0x406   :  { %1618 = vmatpush3.bf16.msra.mxu1 %v1790_v32 }
 0x407   :  { %1647 = vmatprep.subr.bf16.mxu1 %v1791_v34  ;;  %v1837_v34 = vld [vmem:[%s2330_s2 + $0x240] sm:$0xff]  }
 0x409   :  { %1102 = vmatmul.mubr.bf16.vlgmr.msra.gmra.mxu1 %v2095_v35  ;;  %v1838_v35 = vld [vmem:[%s2330_s2 + $0x278] sm:$0xff]  }
 0x40a   :  { %1648 = vmatpush3.bf16.msra.mxu1 %v1792_v36  ;;  %1181 = vmatprep.mubr.bf16.mxu1 %v2101_v37  ;;  %v1839_v36 = vld [vmem:[%s2330_s2 + $0x238] sm:$0xff]   ;;  %v1840_v37 = vld [vmem:[%s2330_s2 + $0x270] sm:$0xff]  }
 0x40b   :  { %1649 = vmatprep.subr.bf16.mxu1 %v1793_v38  ;;  %v1841_v38 = vld [vmem:[%s2330_s2 + $0x230] sm:$0xff]  }
 0x40e   :  { %1650 = vmatpush3.bf16.msra.mxu1 %v1794_v39  ;;  %v1842_v39 = vld [vmem:[%s2330_s2 + $0x268] sm:$0xff]  }
 0x40f   :  { %1651 = vmatprep.subr.bf16.mxu1 %v1795_v40  ;;  %v1843_v40 = vld [vmem:[%s2330_s2 + $0x228] sm:$0xff]  }
 0x412   :  { %1652 = vmatpush3.bf16.msra.mxu1 %v1796_v41  ;;  %v1844_v41 = vld [vmem:[%s2330_s2 + $0x260] sm:$0xff]  }
 0x413   :  { %1653 = vmatprep.subr.bf16.mxu1 %v1797_v42  ;;  %v1845_v42 = vld [vmem:[%s2330_s2 + $0x220] sm:$0xff]  }
 0x416   :  { %1654 = vmatpush3.bf16.msra.mxu1 %v1798_v43  ;;  %v1846_v43 = vld [vmem:[%s2330_s2 + $0x258] sm:$0xff]  }
 0x417   :  { %1655 = vmatprep.subr.bf16.mxu1 %v1799_v44  ;;  %v1847_v44 = vld [vmem:[%s2330_s2 + $0x218] sm:$0xff]  }
 0x41a   :  { %1656 = vmatpush3.bf16.msra.mxu1 %v1800_v45 }
 0x41b   :  { %1657 = vmatprep.subr.bf16.mxu1 %v1801_v46  ;;  %v674_v46 = vcombine.high %v2148_v52, %v2148_v52 }
 0x41e   :  { %1658 = vmatpush3.bf16.msra.mxu1 %v1802_v47 }
 0x41f   :  { %1659 = vmatprep.subr.bf16.mxu1 %v1803_v48 }
 0x422   :  { %1660 = vmatpush3.bf16.msra.mxu1 %v1804_v49 }
 0x423   :  { %1661 = vmatprep.subr.bf16.mxu1 %v1805_v50 }
 0x426   :  { %1662 = vmatpush3.bf16.msra.mxu1 %v1806_v51  ;;  %v1848_v51 = vld [vmem:[%s2330_s2 + $0x2a8] sm:$0xff]  }
 0x427   :  { %1743 = vmatprep.subr.bf16.mxu1 %v1900_v1 }
 0x429   :  { %1182 = vmatmul.mubr.bf16.vlgmr.msra.gmra.mxu1 %v2148_v52  ;;  %v1849_v52 = vld [vmem:[%s2330_s2 + $0x2a0] sm:$0xff]  }
 0x42a   :  { %1744 = vmatpush3.bf16.msra.mxu1 %v1811_v53  ;;  %1747 = vmatprep.mubr.msk.bf16.mxu1 %vm1901_vm1, %v1900_v1  ;;  %v1850_v53 = vld [vmem:[%s2331_s3 + $0x10] ss:$8 sps:$4 sm:$0xff]  }
 0x42b   :  { %1745 = vmatprep.subr.bf16.mxu1 %v1900_v1 }
 0x42e   :  { %1746 = vmatpush3.bf16.msra.mxu1 %v1815_v56  ;;  %v421_v56 = vunpack.c.h.bf16 %v419_v55 }
 0x42f   :  { %1407 = vmatprep.subr.bf16.mxu1 %v1852_v54 }
 0x4a9   :  { %v408_v62 = vpop.f32.mrf.mxu1 }
 0x4aa   :  { %v409_v63 = vadd.f32 %v408_v62, %v358_v61 }
 0x4ab   :  { %v1741_v0 = vpop.f32.mrf.mxu1 }
 0x4ac   :  { %v414_v4 = vpack.c.bf16 %v409_v63, %v409_v63 }
 0x4ad   :  { %v411_v6 = vpop.f32.mrf.mxu1 }
 0x4ae   :  { %1508 = vmatmul.mubr.msk.bf16.vlgmr.msra.gmra.mxu0 %vm102_vm3, %v414_v4  ;;  %1748 = vmatmul.mubr.msk.bf16.vlgmr.msra.gmra.mxu1 %vm102_vm3, %v414_v4 }
 0x4af   :  { %1626 = vmatpush3.bf16.msra.mxu0 %v1817_v2  ;;  %v1742_v7 = vpop.f32.mrf.mxu1  ;;  %1141 = vmatprep.mubr.bf16.mxu0 %v675_v3 }
 0x4b0   :  { %1627 = vmatprep.subr.bf16.mxu0 %v1818_v5  ;;  %1427 = vmatprep.mubr.bf16.mxu1 %v1903_v58  ;;  %v429_v58 = vrot.slane %v421_v56, %v1969_v11 }
 0x4b1   :  { %1408 = vmatpush1.bf16.msra.mxu1 %v1850_v53 }
 0x4b3   :  { %1628 = vmatpush3.bf16.msra.mxu0 %v1819_v9 }
 0x4b4   :  { %1629 = vmatprep.subr.bf16.mxu0 %v1820_v10 }
 0x4b7   :  { %1630 = vmatpush3.bf16.msra.mxu0 %v1821_v12 }
 0x4b8   :  { %1631 = vmatprep.subr.bf16.mxu0 %v1822_v13 }
 0x4bb   :  { %1632 = vmatpush3.bf16.msra.mxu0 %v1823_v8 }
 0x4bc   :  { %1633 = vmatprep.subr.bf16.mxu0 %v1824_v14 }
 0x4bf   :  { %1634 = vmatpush3.bf16.msra.mxu0 %v1825_v15  ;;  %v1281_v15 = vld [vmem:[%s2330_s2 + $0x298] sm:$0x1] }
 0x4c0   :  { %1635 = vmatprep.subr.bf16.mxu0 %v1826_v16 }
 0x4c3   :  { %1636 = vmatpush3.bf16.msra.mxu0 %v1827_v17  ;;  %v1282_v17 = vunpack.c.l.bf16 %v1281_v15 }
 0x4c4   :  { %1637 = vmatprep.subr.bf16.mxu0 %v1828_v18 }
 0x4c7   :  { %1638 = vmatpush3.bf16.msra.mxu0 %v1829_v19 }
 0x4c8   :  { %1639 = vmatprep.subr.bf16.mxu0 %v1830_v20 }
 0x4c9   :  { %v1619_v23 = vpop.f32.mrf.mxu1 }
 0x4cb   :  { %1640 = vmatpush3.bf16.msra.mxu0 %v1831_v21  ;;  %v1620_v27 = vpop.f32.mrf.mxu1 }
 0x4cc   :  { %1669 = vmatprep.subr.bf16.mxu0 %v1832_v22  ;;  %v2236_v29 = vadd.f32 %v1620_v27, %v1619_v23  ;;  %v1286_v22 = vrot.slane %v1282_v17, %v1969_v11 }
 0x4cd   :  { %v1622_v30 = vpop.f32.mrf.mxu1 }
 0x4ce   :  { %1142 = vmatmul.mubr.bf16.vlgmr.msra.gmra.mxu0 %v673_v24  ;;  %v1294_v30 = vld [vmem:[%s2330_s2 + $0x2b0] sm:$0x1] }
 0x4cf   :  { %1670 = vmatpush3.bf16.msra.mxu0 %v1833_v25  ;;  %1221 = vmatprep.mubr.bf16.mxu0 %v676_v26  ;;  %v1623_v32 = vpop.f32.mrf.mxu1 }
 0x4d0   :  { %1671 = vmatprep.subr.bf16.mxu0 %v1834_v28  ;;  %v1855_v28 = vld [vmem:[%s2331_s3 + $0x4] ss:$8 sps:$4 sm:$0xff]  }
 0x4d1   :  { %1409 = vmatprep.subr.bf16.mxu1 %v1855_v28 }
 0x4d3   :  { %1672 = vmatpush3.bf16.msra.mxu0 %v1835_v31  ;;  %v1295_v31 = vunpack.c.l.bf16 %v1294_v30 }
 0x4d4   :  { %1673 = vmatprep.subr.bf16.mxu0 %v1836_v33 }
 0x4d5   :  { %v1299_v32 = vrot.slane %v1295_v31, %v1969_v11 }
 0x4d7   :  { %1674 = vmatpush3.bf16.msra.mxu0 %v1837_v34 }
 0x4d8   :  { %1675 = vmatprep.subr.bf16.mxu0 %v1838_v35 }
 0x4db   :  { %1676 = vmatpush3.bf16.msra.mxu0 %v1839_v36 }
 0x4dc   :  { %1677 = vmatprep.subr.bf16.mxu0 %v1840_v37 }
 0x4df   :  { %1678 = vmatpush3.bf16.msra.mxu0 %v1841_v38 }
 0x4e0   :  { %1679 = vmatprep.subr.bf16.mxu0 %v1842_v39 }
 0x4e3   :  { %1680 = vmatpush3.bf16.msra.mxu0 %v1843_v40 }
 0x4e4   :  { %1681 = vmatprep.subr.bf16.mxu0 %v1844_v41 }
 0x4e7   :  { %1682 = vmatpush3.bf16.msra.mxu0 %v1845_v42 }
 0x4e8   :  { %1683 = vmatprep.subr.bf16.mxu0 %v1846_v43 }
 0x4e9   :  { %v1663_v45 = vpop.f32.mrf.mxu1 }
 0x4eb   :  { %1684 = vmatpush3.bf16.msra.mxu0 %v1847_v44  ;;  %v1664_v47 = vpop.f32.mrf.mxu1 }
 0x4ec   :  { %v1665_v48 = vadd.f32 %v1664_v47, %v1663_v45  ;;  %1751 = vmatprep.subr.bf16.mxu0 %v1900_v1 }
 0x4ed   :  { %v1666_v49 = vpop.f32.mrf.mxu1 }
 0x4ee   :  { %1222 = vmatmul.mubr.bf16.vlgmr.msra.gmra.mxu0 %v674_v46 }
 0x4ef   :  { %v1667_v50 = vpop.f32.mrf.mxu1  ;;  %1755 = vmatprep.mubr.msk.bf16.mxu0 %vm1901_vm1, %v1900_v1  ;;  %1752 = vmatpush3.bf16.msra.mxu0 %v1848_v51 }
 0x4f0   :  { %1753 = vmatprep.subr.bf16.mxu0 %v1900_v1  ;;  %v420_v1 = vunpack.c.l.bf16 %v419_v55 }
 0x4f2   :  { %v425_v57 = vrot.slane %v420_v1, %v1969_v11 }
 0x4f3   :  { %1754 = vmatpush3.bf16.msra.mxu0 %v1849_v52 }
 0x56e   :  { %v487_v59 = vpop.f32.mrf.mxu0  ;;  %v1275_v60 = vpop.f32.mrf.mxu1 }
 0x56f   :  { %v488_v63 = vadd.f32 %v487_v59, %v425_v57 }
 0x570   :  { %v489_v61 = vpop.f32.mrf.mxu0  ;;  %v1749_v62 = vpop.f32.mrf.mxu1 }
 0x571   :  { %v490_v0 = vadd.f32 %v489_v61, %v429_v58 }
 0x572   :  { %v491_v2 = vpop.f32.mrf.mxu0  ;;  %v1278_v3 = vpop.f32.mrf.mxu1 }
 0x573   :  { %v1438_v4 = vcombine.low %v488_v63, %v490_v0 }
 0x574   :  { %v492_v5 = vpop.f32.mrf.mxu0  ;;  %v1750_v6 = vpop.f32.mrf.mxu1 }
 0x575   :  { %1584 = vst.sshfl [vmem:[#allocation2] sm:$0x33 pattern:$0x76325410] %v1438_v4 }
 0x58e   :  { %v1641_v7 = vpop.f32.mrf.mxu0 }
 0x590   :  { %v1642_v9 = vpop.f32.mrf.mxu0 }
 0x591   :  { %v1643_v10 = vadd.f32 %v1642_v9, %v1641_v7 }
 0x592   :  { %v1644_v12 = vpop.f32.mrf.mxu0 }
 0x593   :  { %v1144_v13 = vadd.f32 %v1643_v10, %v2236_v29  ;;  %v1853_v29 = vld [vmem:[%s2331_s3] ss:$8 sps:$4 sm:$0xff]  }
 0x594   :  { %v1645_v8 = vpop.f32.mrf.mxu0  ;;  %1410 = vmatpush1.bf16.msra.mxu1 %v1853_v29 }
 0x595   :  { %v1184_v14 = vadd.f32 %v1665_v48, %v1144_v13 }
 0x5ae   :  { %v1685_v16 = vpop.f32.mrf.mxu0 }
 0x5b0   :  { %v1686_v18 = vpop.f32.mrf.mxu0 }
 0x5b1   :  { %v1687_v19 = vadd.f32 %v1686_v18, %v1685_v16 }
 0x5b2   :  { %v1688_v20 = vpop.f32.mrf.mxu0 }
 0x5b3   :  { %v1224_v21 = vadd.f32 %v1687_v19, %v1184_v14 }
 0x5b4   :  { %v1689_v23 = vpop.f32.mrf.mxu0 }
 0x5b5   :  { %v1276_v24 = vadd.f32 %v1275_v60, %v1224_v21 }
 0x5b7   :  { %v1287_v25 = vadd.f32 %v1286_v22, %v1276_v24 }
 0x5b9   :  { %v1288_v26 = vmax.f32 %v1287_v25, 0.0 }
 0x5bb   :  { %v1289_v27 = vpack.c.bf16 %v1288_v26, %v1288_v26 }
 0x5bd   :  { %1756 = vmatmul.mubr.msk.bf16.vlgmr.msra.gmra.mxu0 %vm102_vm3, %v1289_v27 }
 0x67d   :  { %v1349_v33 = vpop.f32.mrf.mxu0 }
 0x67e   :  { %v1350_v34 = vadd.f32 %v1349_v33, %v1299_v32 }
 0x67f   :  { %v1757_v35 = vpop.f32.mrf.mxu0 }
 0x680   :  { %v1355_v36 = vmax.f32 %v1350_v34, 0.0 }
 0x681   :  { %v1352_v37 = vpop.f32.mrf.mxu0 }
 0x682   :  { %v1356_v38 = vpack.c.bf16 %v1355_v36, %v1355_v36 }
 0x683   :  { %v1758_v39 = vpop.f32.mrf.mxu0 }
 0x684   :  { %1583 = vmatmul.mubr.msk.bf16.vlgmr.msra.gmra.mxu1 %vm102_vm3, %v1356_v38 }
 0x685   :  { %1867 = shalt.err (!%p1864_p4)
}
 0x686   :  { %1469 = dma.vmem_to_hbm [thread:$0]  %s1467_s26, 64, %s2332_s4, [#allocation3]   ;;  %v1361_v40 = vld [vmem:[%s2331_s3 + $0x20] sm:$0x11] }
 0x687   :  { %v1362_v41 = vunpack.c.l.bf16 %v1361_v40  ;;  %v1363_v42 = vunpack.c.h.bf16 %v1361_v40  ;;  %s1905_s6 = smov [#allocation4]  }
 0x688   :  { %s1476_s7 = sshll.u32 %s1905_s6, 4  ;;  %s1477_s7 = int_to_ptr.vmem [resolvable:$true] %s1476_s7 }
 0x689   :  { %v1367_v43 = vrot.slane %v1362_v41, %v1969_v11  ;;  %v1371_v44 = vrot.slane %v1363_v42, %v1969_v11  ;;  %s1876_s4 = scalar_lea.vmem %s1477_s7, 64  ;;  %p1881_p6 = scmp.lt.s32.totalorder %s1477_s7, %s1477_s7 }
 0x68a   :  { %p1877_p5 = scmp.ne.s32.totalorder %s1477_s7, %s1876_s4  ;;  %p1882_p7 = scmp.lt.s32.totalorder %s1876_s4, %s1876_s4 }
 0x68c   :  { %p1883_p8 = por %p1882_p7, %p1881_p6 }
 0x68e   :  { %p1884_p9 = pnand %p1883_p8, %p1877_p5 }
 0x744   :  { %v1429_v45 = vpop.f32.mrf.mxu1 }
 0x745   :  { %v1430_v47 = vadd.f32 %v1429_v45, %v1367_v43 }
 0x746   :  { %v1431_v46 = vpop.f32.mrf.mxu1 }
 0x747   :  { %v1432_v48 = vadd.f32 %v1431_v46, %v1371_v44 }
 0x748   :  { %v1433_v49 = vpop.f32.mrf.mxu1 }
 0x749   :  { %v1450_v50 = vcombine.low %v1430_v47, %v1432_v48 }
 0x74a   :  { %v1434_v51 = vpop.f32.mrf.mxu1 }
 0x74b   :  { %1585 = vst.sshfl [vmem:[#allocation4] sm:$0x33 pattern:$0x76325410] %v1450_v50 }
 0x74c   :  { %1887 = shalt.err (!%p1884_p9)
}
 0x74d   :  { %1479 = dma.vmem_to_hbm [thread:$0]  %s1477_s7, 64, %s2333_s5, [#allocation5]  }
 0x74e   :  { %1896 = dma.done.wait [#allocation3], 64  }
 0x74f   :  { %1897 = vsyncadd [#allocation3], 4294967232 }
 0x750   :  { %1898 = dma.done.wait [#allocation5], 64  }
 0x751   :  { %1899 = vsyncadd [#allocation5], 4294967232 }
 0x752   :  { %1486 = vsyncpa [#allocation3], 1 }
 0x753   :  { %1487 = vsyncpa [#allocation5], 1 }

</bundles_post_ra>
